<compile_context>
chip_gen: v6e
topology: v6e:2x2x1
jax: 0.10.0
libtpu: 0.0.40
codegen_flags: <defaults>
</compile_context>

<pallas_src>
import math
import functools

import jax
import jax.numpy as jnp
from jax.experimental import pallas as pl
from jax.experimental.pallas import tpu as pltpu


def make_pe_table(d_model: int, max_len: int = 500, dtype=jnp.float32):
    """(max_len, d_model) sinusoidal PE buffer, matching the torch __init__."""
    position = jnp.arange(max_len, dtype=jnp.float32)[:, None]               # (L, 1)
    div_term = jnp.exp(
        jnp.arange(0, d_model, 2, dtype=jnp.float32) * (-(math.log(10000.0) / d_model))
    )                                                                         # (ceil(D/2),)
    angles = position * div_term                                              # (L, ceil(D/2))
    pe = jnp.zeros((max_len, d_model), dtype=jnp.float32)
    pe = pe.at[:, 0::2].set(jnp.sin(angles))
    if d_model % 2 != 0:
        pe = pe.at[:, 1::2].set(jnp.cos(angles)[:, :-1])
    else:
        pe = pe.at[:, 1::2].set(jnp.cos(angles))
    return pe.astype(dtype)


def _pe_kernel(seed_ref, x_ref, pe_ref, o_ref, *,
               tile_rows: int, pe_rows: int, pe_sliced: bool,
               keep_threshold: int, inv_keep: float, apply_dropout: bool):
    x = x_ref[...]                                        # (tile_rows, 128)

    if pe_sliced:
        # PE slab (pe_rows, 128) resident in VMEM; this tile's rows start at
        # (global_row % pe_rows).  tile_rows divides pe_rows, so it's in-bounds.
        off = (pl.program_id(0) * tile_rows) % pe_rows
        pe = pe_ref[pl.ds(off, tile_rows), :]
    else:
        pe = pe_ref[...]                                  # (tile_rows, 128)

    y = x + pe

    if apply_dropout:
        # Stateless per-element PRNG: lowbias32 hash of (global index, seed).
        # Integer-domain keep decision: keep iff bits >= p * 2^32.
        row0 = (pl.program_id(0) * tile_rows).astype(jnp.uint32)
        r = jax.lax.broadcasted_iota(jnp.uint32, y.shape, 0)
        c = jax.lax.broadcasted_iota(jnp.uint32, y.shape, 1)
        h = (row0 + r) * jnp.uint32(y.shape[1]) + c
        h = h + seed_ref[0].astype(jnp.uint32) * jnp.uint32(0x9E3779B9)
        h = h ^ (h >> 16)
        h = h * jnp.uint32(0x7FEB352D)
        h = h ^ (h >> 15)
        h = h * jnp.uint32(0x846CA68B)
        h = h ^ (h >> 16)
        keep = h >= jnp.uint32(keep_threshold)
        scale = jnp.asarray(inv_keep, dtype=y.dtype)
        y = jnp.where(keep, y * scale, jnp.zeros_like(y))

    o_ref[...] = y.astype(o_ref.dtype)


# ~1 MiB f32 per (tile_rows, 128) tile; in+out double-buffered ≈ 4 MiB,
# comfortably inside v7x's 32 MiB scoped VMEM default.
_MAX_TILE_ROWS = 2048
_PE_RESIDENT_LIMIT_BYTES = 4 << 20


def positional_encoding_forward(x, pe_table, *, p: float = 0.1,
                                training: bool = False, seed: int = 0):
    """x: (B, L, D).  pe_table: (max_len, D).  Returns (B, L, D)."""
    B, L, D = x.shape
    dtype = x.dtype
    n = L * D
    itemsize = jnp.dtype(dtype).itemsize

    # ---- plan the lane-dense (rows, 128) tiling -----------------------------
    rpb = -(-n // 128)                     # rows per batch (before alignment)
    total = B * rpb

    if total <= _MAX_TILE_ROWS:
        # Whole problem fits in one full-array block.
        tile_rows = total
        k = B                              # tile spans all B batches
        pe_sliced = False
        pe_mode = "pretiled"
    else:
        # Align rows-per-batch to 8 so sub-multiples satisfy the (8,128) rule.
        if rpb % 8:
            rpb = ((rpb + 7) // 8) * 8
        total = B * rpb
        if rpb <= _MAX_TILE_ROWS:
            # Tile spans k whole batches.
            k = max(1, _MAX_TILE_ROWS // rpb)
            k = min(k, B)
            while B % k:
                k -= 1
            tile_rows = k * rpb
            pe_sliced = False
            pe_mode = "pretiled"
        else:
            # Tile is a fraction of one batch: largest multiple of 8 dividing rpb.
            tile_rows = 8
            top = _MAX_TILE_ROWS - (_MAX_TILE_ROWS % 8)
            for cand in range(top, 7, -8):
                if rpb % cand == 0:
                    tile_rows = cand
                    break
            k = None
            if rpb * 128 * itemsize <= _PE_RESIDENT_LIMIT_BYTES:
                pe_sliced = True
                pe_mode = "resident_full"
            else:
                pe_sliced = False
                pe_mode = "streamed"

    # ---- build lane-dense operands ------------------------------------------
    pad = rpb * 128 - n
    x_flat = x.reshape(B, n)
    pe_flat = pe_table[:L, :].astype(dtype).reshape(n)
    if pad:
        x_flat = jnp.pad(x_flat, ((0, 0), (0, pad)))
        pe_flat = jnp.pad(pe_flat, (0, pad))
    x2 = x_flat.reshape(B * rpb, 128)
    pe2 = pe_flat.reshape(rpb, 128)

    if pe_mode == "pretiled":
        pe_arg = jnp.tile(pe2, (k, 1)) if k > 1 else pe2      # (tile_rows, 128)
        pe_spec = pl.BlockSpec((tile_rows, 128), lambda i, s: (0, 0))
    elif pe_mode == "resident_full":
        pe_arg = pe2                                          # (rpb, 128), resident
        pe_spec = pl.BlockSpec((rpb, 128), lambda i, s: (0, 0))
    else:  # "streamed": PE too big for VMEM residency; re-fetch per tile
        pe_arg = pe2
        n_pe_blocks = rpb // tile_rows
        pe_spec = pl.BlockSpec((tile_rows, 128),
                               lambda i, s: (i % n_pe_blocks, 0))

    grid = (total // tile_rows,)
    seed_arr = jnp.array([seed], dtype=jnp.int32)

    apply_dropout = bool(training and p > 0.0)
    keep_threshold = min(int(round(p * 4294967296.0)), 4294967295)
    inv_keep = 1.0 / (1.0 - p) if p < 1.0 else 0.0

    kernel = functools.partial(
        _pe_kernel,
        tile_rows=tile_rows, pe_rows=rpb, pe_sliced=pe_sliced,
        keep_threshold=keep_threshold, inv_keep=inv_keep,
        apply_dropout=apply_dropout)

    grid_spec = pltpu.PrefetchScalarGridSpec(
        num_scalar_prefetch=1,
        grid=grid,
        in_specs=[
            pl.BlockSpec((tile_rows, 128), lambda i, s: (i, 0)),   # x tiles
            pe_spec,                                               # PE slab
        ],
        out_specs=pl.BlockSpec((tile_rows, 128), lambda i, s: (i, 0)),
    )

    out2 = pl.pallas_call(
        kernel,
        out_shape=jax.ShapeDtypeStruct((total, 128), dtype),
        grid_spec=grid_spec,
        compiler_params=pltpu.CompilerParams(
            dimension_semantics=("parallel",),
            vmem_limit_bytes=32 * 1024 * 1024),
    )(seed_arr, x2, pe_arg)

    return out2.reshape(B, rpb * 128)[:, :n].reshape(B, L, D)


if __name__ == "__main__":
    # Small shapes consistent with the module: (batch, seq, d_model)
    B, L, D = 2, 8, 32
    max_len = 500
    p_drop = 0.1

    key = jax.random.PRNGKey(0)
    x = jax.random.normal(key, (B, L, D), dtype=jnp.float32)
    pe_table = make_pe_table(D, max_len=max_len, dtype=jnp.float32)

    # --- eval mode (dropout is identity): verify against a pure-JAX reference ---
    out_eval = jax.block_until_ready(
        positional_encoding_forward(x, pe_table, p=p_drop, training=False))
    ref = x + pe_table[None, :L, :]
    assert out_eval.shape == (B, L, D)
    assert jnp.allclose(out_eval, ref, atol=1e-6, rtol=1e-6), "mismatch vs reference"

    # --- training mode (dropout active, in-kernel stateless hash PRNG) ---
    # TODO(synk): torch.nn.Dropout uses a different RNG stream; only the
    # distributional semantics (Bernoulli keep w.p. 1-p, 1/(1-p) scaling) match.
    out_train = jax.block_until_ready(
        positional_encoding_forward(x, pe_table, p=p_drop, training=True, seed=1234))
    assert out_train.shape == (B, L, D)
    kept = out_train != 0
    scaled = ref / (1.0 - p_drop)
    assert jnp.allclose(jnp.where(kept, out_train, 0.0),
                        jnp.where(kept, scaled, 0.0), atol=1e-5, rtol=1e-5), \
        "kept dropout values should equal (x + pe) / (1 - p)"

    print("KERNEL_OK")
</pallas_src>

<mosaic_0001>
module attributes {stable_mosaic.version = 11 : i64} {
  func.func @_pe_kernel(%arg0: i32, %arg1: memref<1xi32, #tpu.memory_space<smem>>, %arg2: memref<4x128xf32, #tpu.memory_space<vmem>>, %arg3: memref<4x128xf32, #tpu.memory_space<vmem>>, %arg4: memref<4x128xf32, #tpu.memory_space<vmem>>) attributes {dimension_semantics = [#tpu.dimension_semantics<parallel>], iteration_bounds = array<i64: 1>, scalar_prefetch = 1 : i64, scratch_operands = 0 : i64, tpu.core_type = #tpu.core_type<tc>, window_params = [{transform_indices = @transform_0, window_bounds = array<i64: 4, 128>}, {pipeline_mode = #tpu.pipeline_mode<synchronous>, transform_indices = @transform_1, window_bounds = array<i64: 4, 128>}, {transform_indices = @transform_2, window_bounds = array<i64: 4, 128>}]} {
    %c0 = arith.constant 0 : index
    %c0_0 = arith.constant 0 : index
    %0 = vector.load %arg2[%c0, %c0_0] : memref<4x128xf32, #tpu.memory_space<vmem>>, vector<4x128xf32>
    %c0_1 = arith.constant 0 : index
    %c0_2 = arith.constant 0 : index
    %1 = vector.load %arg3[%c0_1, %c0_2] : memref<4x128xf32, #tpu.memory_space<vmem>>, vector<4x128xf32>
    %2 = arith.addf %0, %1 : vector<4x128xf32>
    %c0_3 = arith.constant 0 : index
    %c0_4 = arith.constant 0 : index
    %3 = vector.load %arg4[%c0_3, %c0_4] : memref<4x128xf32, #tpu.memory_space<vmem>>, vector<4x128xf32>
    tpu.vector_store %arg4[%c0_3, %c0_4], %2 {strides = array<i32>} : memref<4x128xf32, #tpu.memory_space<vmem>>, vector<4x128xf32>,
    return
  }
  func.func @transform_0(%arg0: i32, %arg1: memref<1xi32, #tpu.memory_space<smem>>) -> (i32, i32) {
    %c0_i32 = arith.constant 0 : i32
    %c0_i32_0 = arith.constant 0 : i32
    return %arg0, %c0_i32 : i32, i32
  }
  func.func @transform_1(%arg0: i32, %arg1: memref<1xi32, #tpu.memory_space<smem>>) -> (i32, i32) {
    %c0_i32 = arith.constant 0 : i32
    %c0_i32_0 = arith.constant 0 : i32
    %c0_i32_1 = arith.constant 0 : i32
    return %c0_i32, %c0_i32_0 : i32, i32
  }
  func.func @transform_2(%arg0: i32, %arg1: memref<1xi32, #tpu.memory_space<smem>>) -> (i32, i32) {
    %c0_i32 = arith.constant 0 : i32
    %c0_i32_0 = arith.constant 0 : i32
    return %arg0, %c0_i32 : i32, i32
  }
}

</mosaic_0001>

<bundles_post_ra>
// kernel: tpu_custom_call.1
= control target key start
LH: loop header
LB: loop body
LE: loop exit
PB: predicated region body
PF: predicated region fallthrough
CT: control target
= control target key end

     0   :  { %9 = vsyncpa [#allocation5], 0  ;;  %s159_s0 = inlined_call_operand.<no memory space> [shape: s32[1], index: 0, kind: input, shape index: {}]   ;;  %s160_s1 = inlined_call_operand.hbm [shape: f32[4,128], index: 1, kind: input, shape index: {}]   ;;  %s161_s2 = inlined_call_operand.hbm [shape: f32[4,128], index: 2, kind: input, shape index: {}]   ;;  %s162_s3 = inlined_call_operand.hbm [shape: f32[4,128], index: 3, kind: output, shape index: {}]  }
   0x1   :  { %10 = vsyncpa [#allocation8], 0 }
   0x2   :  { %11 = vsyncpa [#allocation6], 0  ;;  %s127_s12 = smov [#allocation4]   ;;  %s128_s14 = smov [#allocation7]  }
   0x3   :  { %s18_s13 = sshll.u32 %s127_s12, 4  ;;  %s28_s15 = sshll.u32 %s128_s14, 4  ;;  %s19_s13 = int_to_ptr.vmem [resolvable:$true] %s18_s13  ;;  %s29_s15 = int_to_ptr.vmem [resolvable:$true] %s28_s15 }
   0x4   :  { %s69_s16 = scalar_lea.vmem %s19_s13, 64  ;;  %p74_p1 = scmp.lt.s32.totalorder %s19_s13, %s19_s13 }
   0x5   :  { %p70_p0 = scmp.ne.s32.totalorder %s19_s13, %s69_s16  ;;  %p75_p2 = scmp.lt.s32.totalorder %s69_s16, %s69_s16 }
   0x7   :  { %p76_p3 = por %p75_p2, %p74_p1 }
   0x9   :  { %p77_p4 = pnand %p76_p3, %p70_p0 }
   0xb   :  { %80 = shalt.err (!%p77_p4)
}
   0xc   :  { %21 = dma.hbm_to_vmem [thread:$0]  %s160_s1, 64, %s19_s13, [#allocation5]  }
   0xd   :  { %s89_s18 = scalar_lea.vmem %s29_s15, 64  ;;  %p94_p6 = scmp.lt.s32.totalorder %s29_s15, %s29_s15 }
   0xe   :  { %p90_p5 = scmp.ne.s32.totalorder %s29_s15, %s89_s18  ;;  %p95_p7 = scmp.lt.s32.totalorder %s89_s18, %s89_s18 }
  0x10   :  { %p96_p8 = por %p95_p7, %p94_p6 }
  0x12   :  { %p97_p9 = pnand %p96_p8, %p90_p5 }
  0x14   :  { %100 = shalt.err (!%p97_p9)
}
  0x15   :  { %31 = dma.hbm_to_vmem [thread:$0]  %s161_s2, 64, %s29_s15, [#allocation8]  }
  0x16   :  { %121 = dma.done.wait [#allocation5], 64  }
  0x17   :  { %122 = vsyncadd [#allocation5], 4294967232 }
  0x18   :  { %123 = dma.done.wait [#allocation8], 64  }
  0x19   :  { %124 = vsyncadd [#allocation8], 4294967232  ;;  %s129_s21 = smov [#allocation9]   ;;  %v38_v0 = vld [vmem:[#allocation4] sm:$0xf] }
  0x1a   :  { %s48_s22 = sshll.u32 %s129_s21, 4  ;;  %v39_v1 = vld [vmem:[#allocation7] sm:$0xf]  ;;  %s49_s22 = int_to_ptr.vmem [resolvable:$true] %s48_s22 }
  0x1b   :  { %v40_v2 = vadd.f32 %v39_v1, %v38_v0  ;;  %s101_s1 = scalar_lea.vmem %s49_s22, 64  ;;  %p106_p11 = scmp.lt.s32.totalorder %s49_s22, %s49_s22 }
  0x1c   :  { %p102_p10 = scmp.ne.s32.totalorder %s49_s22, %s101_s1  ;;  %p107_p12 = scmp.lt.s32.totalorder %s101_s1, %s101_s1 }
  0x1d   :  { %41 = vst [vmem:[#allocation9] sm:$0xf] %v40_v2 }
  0x1e   :  { %p108_p13 = por %p107_p12, %p106_p11 }
  0x20   :  { %p109_p0 = pnand %p108_p13, %p102_p10 }
  0x22   :  { %112 = shalt.err (!%p109_p0)
}
  0x23   :  { %51 = dma.vmem_to_hbm [thread:$0]  %s49_s22, 64, %s162_s3, [#allocation6]  }
  0x24   :  { %125 = dma.done.wait [#allocation6], 64  }
  0x25   :  { %126 = vsyncadd [#allocation6], 4294967232 }
  0x26   :  { %55 = vsyncpa [#allocation5], 1 }
  0x27   :  { %56 = vsyncpa [#allocation8], 1 }
  0x28   :  { %57 = vsyncpa [#allocation6], 1 }

</bundles_post_ra>
